<compile_context>
chip_gen: v5e
topology: v5e:2x2
jax: 0.10.0
libtpu: 0.0.40
codegen_flags: <defaults>
</compile_context>

<pallas_src>
import jax
import jax.numpy as jnp
from jax.experimental import pallas as pl
from jax.experimental.pallas import tpu as pltpu


def _focus_conv_kernel(x_ref, w_ref, scale_ref, bias_ref, o_ref):
    # x_ref: (TM, K)   w_ref: (K, N)   scale/bias: (1, N)   o_ref: (TM, N)
    x = x_ref[...].astype(jnp.float32)
    w = w_ref[...].astype(jnp.float32)
    # 1x1 conv == matmul over the (4*C) channel dim -> MXU, f32 accumulation.
    acc = jnp.dot(x, w, preferred_element_type=jnp.float32)
    # Folded BatchNorm (eval mode): per-output-channel scale + bias.
    y = acc * scale_ref[...] + bias_ref[...]
    # SiLU: y * sigmoid(y). One exp per element (EUP) + VPU math.
    sig = 1.0 / (1.0 + jnp.exp(-y))
    o_ref[...] = (y * sig).astype(o_ref.dtype)


def focus_forward(x, w, scale, bias, *, block_rows=512):
    """Forward pass of Focus(in_channels, out_channels, ksize=1, stride=1, act='silu').

    x:     (B, C, H, W)  NCHW input, H and W even
    w:     (4*C, Cout)   1x1 conv weight (rows in cat order [TL, BL, TR, BR])
    scale: (Cout,)       folded BN scale  = gamma / sqrt(running_var + eps)
    bias:  (Cout,)       folded BN bias   = beta - running_mean * scale
    returns (B, Cout, H//2, W//2)
    """
    B, C, H, W = x.shape
    K, N = w.shape
    assert K == 4 * C and H % 2 == 0 and W % 2 == 0
    Ho, Wo = H // 2, W // 2

    # ---- space-to-depth (layout only, same order as the PyTorch cat) ----
    tl = x[..., ::2, ::2]
    tr = x[..., ::2, 1::2]
    bl = x[..., 1::2, ::2]
    br = x[..., 1::2, 1::2]
    xs = jnp.concatenate([tl, bl, tr, br], axis=1)            # (B, 4C, Ho, Wo)

    # Present a lane-dense (M, K) slab to the kernel (channels last).
    x2d = jnp.transpose(xs, (0, 2, 3, 1)).reshape(B * Ho * Wo, K)
    M = x2d.shape[0]

    scale2d = scale.reshape(1, N).astype(jnp.float32)
    bias2d = bias.reshape(1, N).astype(jnp.float32)

    # Large row-blocks (multiple of 8); cdiv grid, no wrapper-side padding.
    tm = min(block_rows, ((M + 7) // 8) * 8)
    grid = (pl.cdiv(M, tm),)

    cost = pl.CostEstimate(
        flops=2 * M * K * N,
        transcendentals=M * N,
        bytes_accessed=(M * K + K * N + M * N) * x.dtype.itemsize,
    )

    out2d = pl.pallas_call(
        _focus_conv_kernel,
        out_shape=jax.ShapeDtypeStruct((M, N), x.dtype),
        grid_spec=pltpu.PrefetchScalarGridSpec(
            num_scalar_prefetch=0,
            grid=grid,
            in_specs=[
                pl.BlockSpec((tm, K), lambda i: (i, 0)),   # activations (tiled)
                pl.BlockSpec((K, N), lambda i: (0, 0)),    # weight (resident)
                pl.BlockSpec((1, N), lambda i: (0, 0)),    # folded BN scale
                pl.BlockSpec((1, N), lambda i: (0, 0)),    # folded BN bias
            ],
            out_specs=pl.BlockSpec((tm, N), lambda i: (i, 0)),
        ),
        compiler_params=pltpu.CompilerParams(
            dimension_semantics=("parallel",),
        ),
        cost_estimate=cost,
    )(x2d, w, scale2d, bias2d)

    # TODO(synk): only ksize=1, stride=1 (the Focus default) is implemented as a
    # fused matmul; a general ksize>1 spatial conv is not lowered here.
    return jnp.transpose(out2d.reshape(B, Ho, Wo, N), (0, 3, 1, 2))


if __name__ == "__main__":
    key = jax.random.PRNGKey(0)
    k1, k2, k3, k4 = jax.random.split(key, 4)

    B, C, H, W = 2, 4, 16, 16
    Cout = 32

    x = jax.random.normal(k1, (B, C, H, W), dtype=jnp.float32)
    w = jax.random.normal(k2, (4 * C, Cout), dtype=jnp.float32) * 0.1
    # Folded BatchNorm (eval-mode) parameters.
    scale = jax.random.uniform(k3, (Cout,), dtype=jnp.float32, minval=0.5, maxval=1.5)
    bias = jax.random.normal(k4, (Cout,), dtype=jnp.float32) * 0.1

    y = focus_forward(x, w, scale, bias)
    jax.block_until_ready(y)

    # Plain-JAX reference mirroring PyTorch Focus.forward (ksize=1, BN folded, SiLU).
    tl = x[..., ::2, ::2]
    tr = x[..., ::2, 1::2]
    bl = x[..., 1::2, ::2]
    br = x[..., 1::2, 1::2]
    xs = jnp.concatenate([tl, bl, tr, br], axis=1)            # (B, 4C, H/2, W/2)
    conv = jnp.einsum('bchw,co->bohw', xs, w)
    yref = conv * scale[None, :, None, None] + bias[None, :, None, None]
    yref = yref * (1.0 / (1.0 + jnp.exp(-yref)))

    assert y.shape == (B, Cout, H // 2, W // 2) and y.dtype == x.dtype
    assert jnp.allclose(y, yref, atol=1e-4, rtol=1e-4), "mismatch vs reference"
    print("KERNEL_OK")
</pallas_src>

<mosaic_0001>
module attributes {stable_mosaic.version = 11 : i64} {
  func.func @_focus_conv_kernel(%arg0: i32, %arg1: memref<128x16xf32, #tpu.memory_space<vmem>>, %arg2: memref<16x32xf32, #tpu.memory_space<vmem>>, %arg3: memref<1x32xf32, #tpu.memory_space<vmem>>, %arg4: memref<1x32xf32, #tpu.memory_space<vmem>>, %arg5: memref<128x32xf32, #tpu.memory_space<vmem>>) attributes {dimension_semantics = [#tpu.dimension_semantics<parallel>], iteration_bounds = array<i64: 1>, scalar_prefetch = 0 : i64, scratch_operands = 0 : i64, tpu.core_type = #tpu.core_type<tc>, window_params = [{transform_indices = @transform_0, window_bounds = array<i64: 128, 16>}, {pipeline_mode = #tpu.pipeline_mode<synchronous>, transform_indices = @transform_1, window_bounds = array<i64: 16, 32>}, {pipeline_mode = #tpu.pipeline_mode<synchronous>, transform_indices = @transform_2, window_bounds = array<i64: 1, 32>}, {pipeline_mode = #tpu.pipeline_mode<synchronous>, transform_indices = @transform_3, window_bounds = array<i64: 1, 32>}, {transform_indices = @transform_4, window_bounds = array<i64: 128, 32>}]} {
    %c0 = arith.constant 0 : index
    %c0_0 = arith.constant 0 : index
    %0 = vector.load %arg1[%c0, %c0_0] : memref<128x16xf32, #tpu.memory_space<vmem>>, vector<128x16xf32>
    %c0_1 = arith.constant 0 : index
    %c0_2 = arith.constant 0 : index
    %1 = vector.load %arg2[%c0_1, %c0_2] : memref<16x32xf32, #tpu.memory_space<vmem>>, vector<16x32xf32>
    %cst = arith.constant dense<0.000000e+00> : vector<128x32xf32>
    %2 = tpu.matmul %0, %1, %cst {dimension_numbers = #tpu.dot_dimension_numbers<[1], [0], [0], [1], [0, 0, 1, 1], [], []>} : vector<128x16xf32>, vector<16x32xf32>, vector<128x32xf32> -> vector<128x32xf32>
    %c0_3 = arith.constant 0 : index
    %c0_4 = arith.constant 0 : index
    %3 = vector.load %arg3[%c0_3, %c0_4] : memref<1x32xf32, #tpu.memory_space<vmem>>, vector<1x32xf32>
    %4 = vector.broadcast %3 : vector<1x32xf32> to vector<128x32xf32>
    %5 = arith.mulf %2, %4 : vector<128x32xf32>
    %c0_5 = arith.constant 0 : index
    %c0_6 = arith.constant 0 : index
    %6 = vector.load %arg4[%c0_5, %c0_6] : memref<1x32xf32, #tpu.memory_space<vmem>>, vector<1x32xf32>
    %7 = vector.broadcast %6 : vector<1x32xf32> to vector<128x32xf32>
    %8 = arith.addf %5, %7 : vector<128x32xf32>
    %cst_7 = arith.constant 0.000000e+00 : f32
    %9 = vector.broadcast %cst_7 : f32 to vector<128x32xf32>
    %10 = arith.subf %9, %8 : vector<128x32xf32>
    %11 = math.exp %10 : vector<128x32xf32>
    %cst_8 = arith.constant 1.000000e+00 : f32
    %12 = vector.broadcast %cst_8 : f32 to vector<128x32xf32>
    %13 = arith.addf %12, %11 : vector<128x32xf32>
    %cst_9 = arith.constant 1.000000e+00 : f32
    %14 = vector.broadcast %cst_9 : f32 to vector<128x32xf32>
    %15 = arith.divf %14, %13 : vector<128x32xf32>
    %16 = arith.mulf %8, %15 : vector<128x32xf32>
    %c0_10 = arith.constant 0 : index
    %c0_11 = arith.constant 0 : index
    %17 = vector.load %arg5[%c0_10, %c0_11] : memref<128x32xf32, #tpu.memory_space<vmem>>, vector<128x32xf32>
    tpu.vector_store %arg5[%c0_10, %c0_11], %16 {strides = array<i32>} : memref<128x32xf32, #tpu.memory_space<vmem>>, vector<128x32xf32>,
    return
  }
  func.func @transform_0(%arg0: i32) -> (i32, i32) {
    %c0_i32 = arith.constant 0 : i32
    %c0_i32_0 = arith.constant 0 : i32
    return %arg0, %c0_i32 : i32, i32
  }
  func.func @transform_1(%arg0: i32) -> (i32, i32) {
    %c0_i32 = arith.constant 0 : i32
    %c0_i32_0 = arith.constant 0 : i32
    %c0_i32_1 = arith.constant 0 : i32
    return %c0_i32, %c0_i32_0 : i32, i32
  }
  func.func @transform_2(%arg0: i32) -> (i32, i32) {
    %c0_i32 = arith.constant 0 : i32
    %c0_i32_0 = arith.constant 0 : i32
    %c0_i32_1 = arith.constant 0 : i32
    return %c0_i32, %c0_i32_0 : i32, i32
  }
  func.func @transform_3(%arg0: i32) -> (i32, i32) {
    %c0_i32 = arith.constant 0 : i32
    %c0_i32_0 = arith.constant 0 : i32
    %c0_i32_1 = arith.constant 0 : i32
    return %c0_i32, %c0_i32_0 : i32, i32
  }
  func.func @transform_4(%arg0: i32) -> (i32, i32) {
    %c0_i32 = arith.constant 0 : i32
    %c0_i32_0 = arith.constant 0 : i32
    return %arg0, %c0_i32 : i32, i32
  }
}

</mosaic_0001>

<bundles_post_ra>
// kernel: tpu_custom_call.1
= control target key start
LH: loop header
LB: loop body
LE: loop exit
PB: predicated region body
PF: predicated region fallthrough
CT: control target
= control target key end

     0   :  { %vm35_vm0 = vcmask 130048   ;;  %vm509_vm4 = vcmask 261120   ;;  %s1051_s1 = inlined_call_operand.vmem [shape: f32[16,32], index: 1, kind: input, shape index: {}]   ;;  %s1052_s0 = inlined_call_operand.vmem [shape: f32[128,16], index: 0, kind: input, shape index: {}]   ;;  %s1053_s2 = inlined_call_operand.vmem [shape: f32[1,32], index: 2, kind: input, shape index: {}]   ;;  %s1054_s3 = inlined_call_operand.vmem [shape: f32[1,32], index: 3, kind: input, shape index: {}]   ;;  %s1055_s4 = inlined_call_operand.vmem [shape: f32[128,32], index: 4, kind: output, shape index: {}]  }
   0x1   :  { %v34_v0 = vld [vmem:[%s1051_s1 + $0x8] sm:$0xff]  ;;  %v33_v1 = vld [vmem:[%s1051_s1] sm:$0xff]  ;;  %v19_v10 = vld [vmem:[%s1052_s0 + $0x10] sm:$0xff] }
   0x2   :  { %98 = vmatpush.msra.mxu0 %v34_v0  ;;  %546 = vmatpush.msra.mxu1 %v34_v0  ;;  %v17_v2 = vld [vmem:[%s1052_s0] sm:$0xff]  ;;  %v18_v6 = vld [vmem:[%s1052_s0 + $0x8] sm:$0xff]  ;;  %v23_v11 = vld [vmem:[%s1052_s0 + $0x30] sm:$0xff] }
   0x3   :  { %547 = vmatpush.msra.mxu2 %v34_v0  ;;  %548 = vmatpush.msra.mxu3 %v34_v0  ;;  %v21_v3 = vld [vmem:[%s1052_s0 + $0x20] sm:$0xff]  ;;  %v22_v7 = vld [vmem:[%s1052_s0 + $0x28] sm:$0xff]  ;;  %v27_v12 = vld [vmem:[%s1052_s0 + $0x50] sm:$0xff] }
   0x4   :  { %99 = vmatpush.msra.mxu0 %v33_v1  ;;  %549 = vmatpush.msra.mxu1 %v33_v1  ;;  %v25_v4 = vld [vmem:[%s1052_s0 + $0x40] sm:$0xff]  ;;  %v26_v8 = vld [vmem:[%s1052_s0 + $0x48] sm:$0xff]  ;;  %v31_v13 = vld [vmem:[%s1052_s0 + $0x70] sm:$0xff] }
   0x5   :  { %v29_v5 = vld [vmem:[%s1052_s0 + $0x60] sm:$0xff]  ;;  %550 = vmatpush.msra.mxu2 %v33_v1  ;;  %551 = vmatpush.msra.mxu3 %v33_v1  ;;  %v30_v9 = vld [vmem:[%s1052_s0 + $0x68] sm:$0xff]  ;;  %v20_v14 = vld [vmem:[%s1052_s0 + $0x18] sm:$0xff] }
   0x6   :  { %530 = vmatmul.msk.f32.vlgmr.msra.gmra.mxu0 %vm35_vm0, %v17_v2  ;;  %534 = vmatmul.msk.f32.vlgmr.msra.gmra.mxu1 %vm35_vm0, %v21_v3  ;;  %v24_v15 = vld [vmem:[%s1052_s0 + $0x38] sm:$0xff]  ;;  %v716_v18 = vld [vmem:[%s1053_s2] ss:$0 sm:$0xff] }
   0x7   :  { %538 = vmatmul.msk.f32.vlgmr.msra.gmra.mxu2 %vm35_vm0, %v25_v4  ;;  %542 = vmatmul.msk.f32.vlgmr.msra.gmra.mxu3 %vm35_vm0, %v29_v5  ;;  %v28_v16 = vld [vmem:[%s1052_s0 + $0x58] sm:$0xff]  ;;  %v721_v19 = vld [vmem:[%s1054_s3] ss:$0 sm:$0xff] }
   0x8   :  { %v32_v17 = vld [vmem:[%s1052_s0 + $0x78] sm:$0xff] }
   0xe   :  { %531 = vmatmul.msk.f32.gmra.mxu0 %vm35_vm0, %v18_v6  ;;  %535 = vmatmul.msk.f32.gmra.mxu1 %vm35_vm0, %v22_v7 }
   0xf   :  { %539 = vmatmul.msk.f32.gmra.mxu2 %vm35_vm0, %v26_v8  ;;  %543 = vmatmul.msk.f32.gmra.mxu3 %vm35_vm0, %v30_v9 }
  0x16   :  { %532 = vmatmul.msk.f32.gmra.mxu0 %vm35_vm0, %v19_v10  ;;  %536 = vmatmul.msk.f32.gmra.mxu1 %vm35_vm0, %v23_v11 }
  0x17   :  { %540 = vmatmul.msk.f32.gmra.mxu2 %vm35_vm0, %v27_v12  ;;  %544 = vmatmul.msk.f32.gmra.mxu3 %vm35_vm0, %v31_v13 }
  0x1e   :  { %533 = vmatmul.msk.f32.gmra.mxu0 %vm35_vm0, %v20_v14  ;;  %537 = vmatmul.msk.f32.gmra.mxu1 %vm35_vm0, %v24_v15 }
  0x1f   :  { %541 = vmatmul.msk.f32.gmra.mxu2 %vm35_vm0, %v28_v16  ;;  %545 = vmatmul.msk.f32.gmra.mxu3 %vm35_vm0, %v32_v17 }
  0x83   :  { %v101_v20 = vpop.f32.mrf.mxu0  ;;  %v113_v21 = vpop.f32.mrf.mxu1 }
  0x84   :  { %v153_v22 = vmul.f32 %v716_v18, %v101_v20  ;;  %v157_v23 = vmul.f32 %v716_v18, %v113_v21 }
  0x86   :  { %v726_v24 = vadd.f32 %v721_v19, %v153_v22  ;;  %v729_v25 = vadd.f32 %v721_v19, %v157_v23 }
  0x88   :  { %v189_v26 = vsub.f32 0.0, %v726_v24  ;;  %v193_v27 = vsub.f32 0.0, %v729_v25 }
  0x8a   :  { %v205_v28 = vmul.f32 1.442695, %v189_v26  ;;  %v213_v29 = vmul.f32 1.442695, %v193_v27  ;;  %v125_v30 = vpop.f32.mrf.mxu2  ;;  %v137_v31 = vpop.f32.mrf.mxu3 }
  0x8b   :  { %v161_v32 = vmul.f32 %v716_v18, %v125_v30  ;;  %v165_v33 = vmul.f32 %v716_v18, %v137_v31  ;;  %v104_v34 = vpop.f32.mrf.mxu0  ;;  %v116_v35 = vpop.f32.mrf.mxu1 }
  0x8c   :  { %554 = vpow2.f32 %v205_v28  ;;  %v154_v36 = vmul.f32 %v716_v18, %v104_v34  ;;  %v158_v37 = vmul.f32 %v716_v18, %v116_v35 }
  0x8d   :  { %556 = vpow2.f32 %v213_v29  ;;  %v738_v38 = vadd.f32 %v721_v19, %v161_v32  ;;  %v741_v39 = vadd.f32 %v721_v19, %v165_v33 }
  0x8e   :  { %v744_v40 = vadd.f32 %v721_v19, %v154_v36  ;;  %v747_v41 = vadd.f32 %v721_v19, %v158_v37 }
  0x8f   :  { %v197_v42 = vsub.f32 0.0, %v738_v38  ;;  %v201_v43 = vsub.f32 0.0, %v741_v39 }
  0x90   :  { %v190_v44 = vsub.f32 0.0, %v744_v40  ;;  %v194_v45 = vsub.f32 0.0, %v747_v41 }
  0x91   :  { %v221_v46 = vmul.f32 1.442695, %v197_v42  ;;  %v229_v47 = vmul.f32 1.442695, %v201_v43 }
  0x92   :  { %v555_v48 = vpop.eup %554  ;;  %v128_v49 = vpop.f32.mrf.mxu2  ;;  %v207_v52 = vmul.f32 1.442695, %v190_v44  ;;  %v215_v56 = vmul.f32 1.442695, %v194_v45 }
  0x93   :  { %v557_v50 = vpop.eup %556  ;;  %v753_v51 = vadd.f32 1.0, %v555_v48  ;;  %558 = vpow2.f32 %v221_v46  ;;  %v162_v53 = vmul.f32 %v716_v18, %v128_v49  ;;  %v140_v54 = vpop.f32.mrf.mxu3 }
  0x94   :  { %v756_v55 = vadd.f32 1.0, %v557_v50  ;;  %560 = vpow2.f32 %v229_v47  ;;  %v107_v57 = vpop.f32.mrf.mxu0  ;;  %v166_v58 = vmul.f32 %v716_v18, %v140_v54  ;;  %v119_v59 = vpop.f32.mrf.mxu1 }
  0x95   :  { %562 = vrcp.f32 %v753_v51  ;;  %v762_v60 = vadd.f32 %v721_v19, %v162_v53  ;;  %v155_v61 = vmul.f32 %v716_v18, %v107_v57  ;;  %v262_v62 = vand.u32 2147483647, %v753_v51 }
  0x96   :  { %564 = vrcp.f32 %v756_v55  ;;  %v264_v63 = vand.u32 2147483648, %v753_v51  ;;  %v322_v1 = vand.u32 2147483647, %v756_v55  ;;  %v159_v3 = vmul.f32 %v716_v18, %v119_v59 }
  0x97   :  { %566 = vpow2.f32 %v207_v52  ;;  %v198_v2 = vsub.f32 0.0, %v762_v60  ;;  %v324_v5 = vand.u32 2147483648, %v756_v55  ;;  %v774_v7 = vadd.f32 %v721_v19, %v166_v58 }
  0x98   :  { %568 = vpow2.f32 %v215_v56  ;;  %vm258_vm1 = vweird.f32 %v753_v51  ;;  %vm318_vm2 = vweird.f32 %v756_v55  ;;  %v781_v10 = vadd.f32 %v721_v19, %v155_v61 }
  0x99   :  { %v559_v0 = vpop.eup %558  ;;  %vm784_vm3 = vcmp.eq.f32.partialorder %v262_v62, 8.507059e+37  ;;  %v265_v14 = vor.u32 1.1754944e-38, %v264_v63  ;;  %vm790_vm5 = vcmp.eq.f32.partialorder %v322_v1, 8.507059e+37  ;;  %v223_v20 = vmul.f32 1.442695, %v198_v2 }
  0x9a   :  { %v561_v4 = vpop.eup %560  ;;  %v771_v6 = vadd.f32 1.0, %v559_v0  ;;  %v795_v21 = vadd.f32 %v721_v19, %v159_v3  ;;  %v325_v26 = vor.u32 1.1754944e-38, %v324_v5  ;;  %v202_v27 = vsub.f32 0.0, %v774_v7 }
  0x9b   :  { %v563_v8 = vpop.eup %562  ;;  %v778_v9 = vadd.f32 1.0, %v561_v4  ;;  %v191_v31 = vsub.f32 0.0, %v781_v10 }
  0x9c   :  { %v565_v11 = vpop.eup %564  ;;  %v254_v12 = vmul.f32 %v563_v8, %v753_v51  ;;  %570 = vrcp.f32 %v771_v6  ;;  %v382_v29 = vand.u32 2147483647, %v771_v6  ;;  %v384_v30 = vand.u32 2147483648, %v771_v6 }
  0x9d   :  { %v567_v15 = vpop.eup %566  ;;  %v314_v16 = vmul.f32 %v565_v11, %v756_v55  ;;  %572 = vrcp.f32 %v778_v9  ;;  %vm259_vm6 = vweird.f32 %v563_v8  ;;  %vm319_vm7 = vweird.f32 %v565_v11 }
  0x9e   :  { %v569_v22 = vpop.eup %568  ;;  %v255_v23 = vsub.f32 1.0, %v254_v12  ;;  %v802_v33 = vadd.f32 1.0, %v567_v15  ;;  %574 = vpow2.f32 %v223_v20  ;;  %v195_v36 = vsub.f32 0.0, %v795_v21  ;;  %vm260_vm9 = vmor %vm258_vm1, %vm259_vm6 }
  0x9f   :  { %v315_v28 = vsub.f32 1.0, %v314_v16  ;;  %v804_v34 = vadd.f32 1.0, %v569_v22  ;;  %vm378_vm8 = vweird.f32 %v771_v6  ;;  %v442_v43 = vand.u32 2147483647, %v778_v9  ;;  %vm320_vm12 = vmor %vm318_vm2, %vm319_vm7 }
  0xa0   :  { %v256_v32 = vmul.f32 %v563_v8, %v255_v23  ;;  %576 = vrcp.f32 %v802_v33  ;;  %vm813_vm10 = vcmp.eq.f32.partialorder %v382_v29, 8.507059e+37  ;;  %v385_v47 = vor.u32 1.1754944e-38, %v384_v30 }
  0xa1   :  { %v316_v35 = vmul.f32 %v565_v11, %v315_v28  ;;  %vm438_vm11 = vweird.f32 %v778_v9  ;;  %v444_v50 = vand.u32 2147483648, %v778_v9  ;;  %578 = vrcp.f32 %v804_v34  ;;  %v131_v28 = vpop.f32.mrf.mxu2 }
  0xa2   :  { %v571_v37 = vpop.eup %570  ;;  %v257_v42 = vadd.f32 %v563_v8, %v256_v32  ;;  %v231_v51 = vmul.f32 1.442695, %v202_v27  ;;  %vm829_vm13 = vcmp.eq.f32.partialorder %v442_v43, 8.507059e+37  ;;  %v277_v59 = vand.u32 2147483647, %v802_v33 }
  0xa3   :  { %v317_v44 = vadd.f32 %v565_v11, %v316_v35  ;;  %v374_v45 = vmul.f32 %v571_v37, %v771_v6  ;;  %v573_v48 = vpop.eup %572  ;;  %vm379_vm14 = vweird.f32 %v571_v37  ;;  %vm273_vm15 = vweird.f32 %v802_v33  ;;  %v143_v35 = vpop.f32.mrf.mxu3 }
  0xa4   :  { %v261_v49 = vsel %vm260_vm9, %v563_v8, %v257_v42  ;;  %v434_v56 = vmul.f32 %v573_v48, %v778_v9  ;;  %v575_v61 = vpop.eup %574  ;;  %580 = vpow2.f32 %v231_v51  ;;  %vm439_vm0 = vweird.f32 %v573_v48  ;;  %vm380_vm1 = vmor %vm378_vm8, %vm379_vm14 }
  0xa5   :  { %v266_v52 = vsel %vm784_vm3, %v265_v14, %v261_v49  ;;  %v321_v53 = vsel %vm320_vm12, %v565_v11, %v317_v44  ;;  %v375_v54 = vsub.f32 1.0, %v374_v45  ;;  %v840_v2 = vadd.f32 1.0, %v575_v61  ;;  %vm440_vm3 = vmor %vm438_vm11, %vm439_vm0  ;;  %v122_v61 = vpop.f32.mrf.mxu1 }
  0xa6   :  { %v493_v57 = vmul.f32 %v266_v52, %v726_v24  ;;  %v326_v58 = vsel %vm790_vm5, %v325_v26, %v321_v53  ;;  %v435_v0 = vsub.f32 1.0, %v434_v56  ;;  %v577_v1 = vpop.eup %576  ;;  %v445_v24 = vor.u32 1.1754944e-38, %v444_v50 }
  0xa7   :  { %v497_v62 = vmul.f32 %v326_v58, %v729_v25  ;;  %v376_v63 = vmul.f32 %v571_v37, %v375_v54  ;;  %v269_v4 = vmul.f32 %v577_v1, %v802_v33  ;;  %v579_v5 = vpop.eup %578  ;;  %vm849_vm2 = vcmp.eq.f32.partialorder %v277_v59, 8.507059e+37 }
  0xa8   :  { %510 = vst.msk [vmem:[%s1055_s4] sm:$0xff] %vm509_vm4, %v493_v57  ;;  %v436_v3 = vmul.f32 %v573_v48, %v435_v0  ;;  %v279_v11 = vand.u32 2147483648, %v802_v33  ;;  %582 = vrcp.f32 %v840_v2  ;;  %v209_v12 = vmul.f32 1.442695, %v191_v31 }
  0xa9   :  { %514 = vst.msk [vmem:[%s1055_s4 + $0x20] sm:$0xff] %vm509_vm4, %v497_v62  ;;  %v377_v25 = vadd.f32 %v571_v37, %v376_v63  ;;  %v270_v15 = vsub.f32 1.0, %v269_v4  ;;  %v329_v16 = vmul.f32 %v579_v5, %v804_v34  ;;  %vm274_vm5 = vweird.f32 %v577_v1 }
  0xaa   :  { %v437_v14 = vadd.f32 %v573_v48, %v436_v3  ;;  %v337_v6 = vand.u32 2147483647, %v804_v34  ;;  %v339_v20 = vand.u32 2147483648, %v804_v34  ;;  %v581_v29 = vpop.eup %580  ;;  %vm333_vm6 = vweird.f32 %v804_v34  ;;  %vm275_vm8 = vmor %vm273_vm15, %vm274_vm5 }
  0xab   :  { %v381_v13 = vsel %vm380_vm1, %v571_v37, %v377_v25  ;;  %v271_v26 = vmul.f32 %v577_v1, %v270_v15  ;;  %v330_v27 = vsub.f32 1.0, %v329_v16  ;;  %vm334_vm7 = vweird.f32 %v579_v5  ;;  %v110_v37 = vpop.f32.mrf.mxu0 }
  0xac   :  { %v386_v17 = vsel %vm813_vm10, %v385_v47, %v381_v13  ;;  %v441_v23 = vsel %vm440_vm3, %v573_v48, %v437_v14  ;;  %584 = vpow2.f32 %v209_v12  ;;  %v871_v32 = vadd.f32 1.0, %v581_v29  ;;  %vm335_vm10 = vmor %vm333_vm6, %vm334_vm7  ;;  %v134_v12 = vpop.f32.mrf.mxu2  ;;  %v146_v13 = vpop.f32.mrf.mxu3 }
  0xad   :  { %v501_v22 = vmul.f32 %v386_v17, %v738_v38  ;;  %v446_v30 = vsel %vm829_vm13, %v445_v24, %v441_v23  ;;  %v272_v38 = vadd.f32 %v577_v1, %v271_v26  ;;  %v331_v31 = vmul.f32 %v579_v5, %v330_v27 }
  0xae   :  { %v505_v9 = vmul.f32 %v446_v30, %v741_v39  ;;  %v583_v42 = vpop.eup %582  ;;  %v280_v43 = vor.u32 1.1754944e-38, %v279_v11  ;;  %vm876_vm9 = vcmp.eq.f32.partialorder %v337_v6, 8.507059e+37  ;;  %v217_v45 = vmul.f32 1.442695, %v195_v36 }
  0xaf   :  { %518 = vst.msk [vmem:[%s1055_s4 + $0x40] sm:$0xff] %vm509_vm4, %v501_v22  ;;  %v163_v39 = vmul.f32 %v716_v18, %v131_v28  ;;  %v276_v46 = vsel %vm275_vm8, %v577_v1, %v272_v38  ;;  %v332_v47 = vadd.f32 %v579_v5, %v331_v31  ;;  %v340_v48 = vor.u32 1.1754944e-38, %v339_v20 }
  0xb0   :  { %522 = vst.msk [vmem:[%s1055_s4 + $0x60] sm:$0xff] %vm509_vm4, %v505_v9  ;;  %v389_v33 = vmul.f32 %v583_v42, %v840_v2  ;;  %v281_v49 = vsel %vm849_vm2, %v280_v43, %v276_v46  ;;  %586 = vrcp.f32 %v871_v32  ;;  %v167_v36 = vmul.f32 %v716_v18, %v143_v35 }
  0xb1   :  { %v156_v50 = vmul.f32 %v716_v18, %v110_v37  ;;  %v494_v51 = vmul.f32 %v281_v49, %v744_v40  ;;  %v336_v52 = vsel %vm335_vm10, %v579_v5, %v332_v47  ;;  %v399_v54 = vand.u32 2147483648, %v840_v2 }
  0xb2   :  { %v390_v53 = vsub.f32 1.0, %v389_v33  ;;  %v585_v56 = vpop.eup %584  ;;  %v341_v57 = vsel %vm876_vm9, %v340_v48, %v336_v52  ;;  %v397_v58 = vand.u32 2147483647, %v840_v2  ;;  %588 = vpow2.f32 %v217_v45 }
  0xb3   :  { %v902_v34 = vadd.f32 %v721_v19, %v163_v39  ;;  %511 = vst.msk [vmem:[%s1055_s4 + $0x8] sm:$0xff] %vm509_vm4, %v494_v51  ;;  %v498_v40 = vmul.f32 %v341_v57, %v747_v41  ;;  %vm394_vm11 = vweird.f32 %v583_v42  ;;  %v909_v59 = vadd.f32 1.0, %v585_v56 }
  0xb4   :  { %v391_v55 = vmul.f32 %v583_v42, %v390_v53  ;;  %v913_v63 = vadd.f32 %v721_v19, %v167_v36  ;;  %v916_v0 = vadd.f32 %v721_v19, %v156_v50  ;;  %vm393_vm12 = vweird.f32 %v840_v2 }
  0xb5   :  { %v199_v62 = vsub.f32 0.0, %v902_v34  ;;  %515 = vst.msk [vmem:[%s1055_s4 + $0x28] sm:$0xff] %vm509_vm4, %v498_v40  ;;  %v400_v41 = vor.u32 1.1754944e-38, %v399_v54  ;;  %590 = vrcp.f32 %v909_v59  ;;  %vm395_vm13 = vmor %vm393_vm12, %vm394_vm11  ;;  %v160_v5 = vmul.f32 %v716_v18, %v122_v61 }
  0xb6   :  { %v392_v1 = vadd.f32 %v583_v42, %v391_v55  ;;  %v587_v24 = vpop.eup %586  ;;  %v203_v3 = vsub.f32 0.0, %v913_v63  ;;  %v192_v4 = vsub.f32 0.0, %v916_v0  ;;  %vm398_vm14 = vcmp.eq.f32.partialorder %v397_v58, 8.507059e+37 }
  0xb7   :  { %v225_v25 = vmul.f32 1.442695, %v199_v62  ;;  %v449_v11 = vmul.f32 %v587_v24, %v871_v32  ;;  %v459_v15 = vand.u32 2147483648, %v871_v32  ;;  %v933_v23 = vadd.f32 %v721_v19, %v160_v5 }
  0xb8   :  { %v396_v8 = vsel %vm395_vm13, %v583_v42, %v392_v1  ;;  %v589_v14 = vpop.eup %588  ;;  %v233_v16 = vmul.f32 1.442695, %v203_v3  ;;  %v211_v22 = vmul.f32 1.442695, %v192_v4  ;;  %v164_v26 = vmul.f32 %v716_v18, %v134_v12 }
  0xb9   :  { %v401_v2 = vsel %vm398_vm14, %v400_v41, %v396_v8  ;;  %592 = vpow2.f32 %v225_v25  ;;  %v450_v6 = vsub.f32 1.0, %v449_v11  ;;  %v930_v20 = vadd.f32 1.0, %v589_v14 }
  0xba   :  { %v502_v17 = vmul.f32 %v401_v2, %v762_v60  ;;  %594 = vpow2.f32 %v233_v16  ;;  %v168_v27 = vmul.f32 %v716_v18, %v146_v13  ;;  %vm454_vm15 = vweird.f32 %v587_v24 }
  0xbb   :  { %v591_v28 = vpop.eup %590  ;;  %v451_v29 = vmul.f32 %v587_v24, %v450_v6  ;;  %v457_v60 = vand.u32 2147483647, %v871_v32  ;;  %596 = vrcp.f32 %v930_v20  ;;  %vm453_vm0 = vweird.f32 %v871_v32 }
  0xbc   :  { %519 = vst.msk [vmem:[%s1055_s4 + $0x48] sm:$0xff] %vm509_vm4, %v502_v17  ;;  %v284_v30 = vmul.f32 %v591_v28, %v909_v59  ;;  %598 = vpow2.f32 %v211_v22  ;;  %v460_v38 = vor.u32 1.1754944e-38, %v459_v15  ;;  %v196_v18 = vsub.f32 0.0, %v933_v23  ;;  %vm455_vm1 = vmor %vm453_vm0, %vm454_vm15 }
  0xbd   :  { %v452_v9 = vadd.f32 %v587_v24, %v451_v29  ;;  %v947_v31 = vadd.f32 %v721_v19, %v164_v26  ;;  %v292_v42 = vand.u32 2147483647, %v909_v59  ;;  %v294_v43 = vand.u32 2147483648, %v909_v59 }
  0xbe   :  { %v285_v37 = vsub.f32 1.0, %v284_v30  ;;  %v952_v44 = vadd.f32 %v721_v19, %v168_v27  ;;  %vm458_vm2 = vcmp.eq.f32.partialorder %v457_v60, 8.507059e+37  ;;  %v219_v39 = vmul.f32 1.442695, %v196_v18 }
  0xbf   :  { %v593_v35 = vpop.eup %592  ;;  %v456_v32 = vsel %vm455_vm1, %v587_v24, %v452_v9  ;;  %vm288_vm3 = vweird.f32 %v909_v59  ;;  %vm289_vm5 = vweird.f32 %v591_v28  ;;  %v200_v36 = vsub.f32 0.0, %v947_v31 }
  0xc0   :  { %v954_v45 = vadd.f32 1.0, %v593_v35  ;;  %v595_v46 = vpop.eup %594  ;;  %v461_v47 = vsel %vm458_vm2, %v460_v38, %v456_v32  ;;  %v286_v48 = vmul.f32 %v591_v28, %v285_v37  ;;  %vm293_vm6 = vcmp.eq.f32.partialorder %v292_v42, 8.507059e+37  ;;  %vm290_vm7 = vmor %vm288_vm3, %vm289_vm5 }
  0xc1   :  { %v597_v33 = vpop.eup %596  ;;  %v506_v49 = vmul.f32 %v461_v47, %v774_v7  ;;  %v295_v51 = vor.u32 1.1754944e-38, %v294_v43  ;;  %vm348_vm8 = vweird.f32 %v930_v20  ;;  %v966_v53 = vadd.f32 1.0, %v595_v46 }
  0xc2   :  { %600 = vrcp.f32 %v954_v45  ;;  %v599_v19 = vpop.eup %598  ;;  %v287_v50 = vadd.f32 %v591_v28, %v286_v48  ;;  %v344_v52 = vmul.f32 %v597_v33, %v930_v20  ;;  %v352_v57 = vand.u32 2147483647, %v930_v20 }
  0xc3   :  { %523 = vst.msk [vmem:[%s1055_s4 + $0x68] sm:$0xff] %vm509_vm4, %v506_v49  ;;  %v968_v7 = vadd.f32 1.0, %v599_v19  ;;  %602 = vpow2.f32 %v219_v39  ;;  %v354_v58 = vand.u32 2147483648, %v930_v20  ;;  %v227_v55 = vmul.f32 1.442695, %v200_v36 }
  0xc4   :  { %v291_v54 = vsel %vm290_vm7, %v591_v28, %v287_v50  ;;  %v345_v56 = vsub.f32 1.0, %v344_v52  ;;  %604 = vrcp.f32 %v966_v53  ;;  %v204_v59 = vsub.f32 0.0, %v952_v44 }
  0xc5   :  { %v296_v40 = vsel %vm293_vm6, %v295_v51, %v291_v54  ;;  %vm349_vm9 = vweird.f32 %v597_v33  ;;  %606 = vrcp.f32 %v968_v7  ;;  %vm353_vm10 = vcmp.eq.f32.partialorder %v352_v57, 8.507059e+37 }
  0xc6   :  { %v495_v61 = vmul.f32 %v296_v40, %v781_v10  ;;  %v346_v62 = vmul.f32 %v597_v33, %v345_v56  ;;  %vm350_vm11 = vmor %vm348_vm8, %vm349_vm9  ;;  %v355_v3 = vor.u32 1.1754944e-38, %v354_v58  ;;  %v412_v10 = vand.u32 2147483647, %v954_v45 }
  0xc7   :  { %608 = vpow2.f32 %v227_v55  ;;  %v235_v4 = vmul.f32 1.442695, %v204_v59  ;;  %v414_v11 = vand.u32 2147483648, %v954_v45  ;;  %vm408_vm13 = vweird.f32 %v954_v45 }
  0xc8   :  { %v601_v1 = vpop.eup %600  ;;  %512 = vst.msk [vmem:[%s1055_s4 + $0x10] sm:$0xff] %vm509_vm4, %v495_v61  ;;  %v347_v41 = vadd.f32 %v597_v33, %v346_v62  ;;  %vm990_vm14 = vcmp.eq.f32.partialorder %v412_v10, 8.507059e+37  ;;  %v472_v27 = vand.u32 2147483647, %v966_v53  ;;  %v474_v29 = vand.u32 2147483648, %v966_v53 }
  0xc9   :  { %v404_v24 = vmul.f32 %v601_v1, %v954_v45  ;;  %v603_v25 = vpop.eup %602  ;;  %610 = vpow2.f32 %v235_v4  ;;  %vm409_vm12 = vweird.f32 %v601_v1  ;;  %v415_v22 = vor.u32 1.1754944e-38, %v414_v11 }
  0xca   :  { %v351_v5 = vsel %vm350_vm11, %v597_v33, %v347_v41  ;;  %v985_v12 = vadd.f32 1.0, %v603_v25  ;;  %v605_v13 = vpop.eup %604  ;;  %vm410_vm15 = vmor %vm408_vm13, %vm409_vm12  ;;  %vm303_vm0 = vweird.f32 %v968_v7  ;;  %v307_v30 = vand.u32 2147483647, %v968_v7 }
  0xcb   :  { %v405_v8 = vsub.f32 1.0, %v404_v24  ;;  %v356_v14 = vsel %vm353_vm10, %v355_v3, %v351_v5  ;;  %v607_v2 = vpop.eup %606  ;;  %v464_v17 = vmul.f32 %v605_v13, %v966_v53  ;;  %vm469_vm1 = vweird.f32 %v605_v13 }
  0xcc   :  { %v499_v15 = vmul.f32 %v356_v14, %v795_v21  ;;  %v299_v20 = vmul.f32 %v607_v2, %v968_v7  ;;  %612 = vrcp.f32 %v985_v12  ;;  %v309_v18 = vand.u32 2147483648, %v968_v7 }
  0xcd   :  { %v406_v16 = vmul.f32 %v601_v1, %v405_v8  ;;  %v465_v26 = vsub.f32 1.0, %v464_v17  ;;  %v609_v28 = vpop.eup %608  ;;  %vm304_vm2 = vweird.f32 %v607_v2  ;;  %vm468_vm3 = vweird.f32 %v966_v53 }
  0xce   :  { %516 = vst.msk [vmem:[%s1055_s4 + $0x30] sm:$0xff] %vm509_vm4, %v499_v15  ;;  %v300_v60 = vsub.f32 1.0, %v299_v20  ;;  %v248_v43 = vadd.f32 1.0, %v609_v28  ;;  %vm470_vm5 = vmor %vm468_vm3, %vm469_vm1  ;;  %v475_v47 = vor.u32 1.1754944e-38, %v474_v29  ;;  %vm473_vm6 = vcmp.eq.f32.partialorder %v472_v27, 8.507059e+37 }
  0xcf   :  { %v407_v21 = vadd.f32 %v601_v1, %v406_v16  ;;  %v466_v38 = vmul.f32 %v605_v13, %v465_v26  ;;  %v611_v35 = vpop.eup %610  ;;  %vm305_vm7 = vmor %vm303_vm0, %vm304_vm2  ;;  %vm308_vm8 = vcmp.eq.f32.partialorder %v307_v30, 8.507059e+37  ;;  %v369_v54 = vand.u32 2147483648, %v985_v12 }
  0xd0   :  { %v301_v42 = vmul.f32 %v607_v2, %v300_v60  ;;  %v1009_v39 = vadd.f32 1.0, %v611_v35  ;;  %614 = vrcp.f32 %v248_v43  ;;  %vm363_vm9 = vweird.f32 %v985_v12 }
  0xd1   :  { %v411_v9 = vsel %vm410_vm15, %v601_v1, %v407_v21  ;;  %v467_v45 = vadd.f32 %v605_v13, %v466_v38  ;;  %v367_v56 = vand.u32 2147483647, %v985_v12  ;;  %v370_v40 = vor.u32 1.1754944e-38, %v369_v54 }
  0xd2   :  { %v416_v37 = vsel %vm990_vm14, %v415_v22, %v411_v9  ;;  %v613_v46 = vpop.eup %612  ;;  %v302_v48 = vadd.f32 %v607_v2, %v301_v42  ;;  %616 = vrcp.f32 %v1009_v39  ;;  %v427_v1 = vand.u32 2147483647, %v248_v43 }
  0xd3   :  { %v503_v32 = vmul.f32 %v416_v37, %v902_v34  ;;  %v471_v33 = vsel %vm470_vm5, %v605_v13, %v467_v45  ;;  %v310_v34 = vor.u32 1.1754944e-38, %v309_v18  ;;  %v359_v49 = vmul.f32 %v613_v46, %v985_v12 }
  0xd4   :  { %v476_v36 = vsel %vm473_vm6, %v475_v47, %v471_v33  ;;  %v306_v19 = vsel %vm305_vm7, %v607_v2, %v302_v48  ;;  %vm364_vm10 = vweird.f32 %v613_v46  ;;  %vm368_vm12 = vcmp.eq.f32.partialorder %v367_v56, 8.507059e+37 }
  0xd5   :  { %520 = vst.msk [vmem:[%s1055_s4 + $0x50] sm:$0xff] %vm509_vm4, %v503_v32  ;;  %v507_v50 = vmul.f32 %v476_v36, %v913_v63  ;;  %v311_v51 = vsel %vm308_vm8, %v310_v34, %v306_v19  ;;  %v360_v52 = vsub.f32 1.0, %v359_v49  ;;  %vm365_vm11 = vmor %vm363_vm9, %vm364_vm10  ;;  %v429_v41 = vand.u32 2147483648, %v248_v43 }
  0xd6   :  { %v496_v53 = vmul.f32 %v311_v51, %v916_v0  ;;  %v615_v57 = vpop.eup %614  ;;  %vm423_vm14 = vweird.f32 %v248_v43  ;;  %v489_v10 = vand.u32 2147483648, %v1009_v39  ;;  %v487_v8 = vand.u32 2147483647, %v1009_v39 }
  0xd7   :  { %524 = vst.msk [vmem:[%s1055_s4 + $0x70] sm:$0xff] %vm509_vm4, %v507_v50  ;;  %v361_v7 = vmul.f32 %v613_v46, %v360_v52  ;;  %v419_v0 = vmul.f32 %v615_v57, %v248_v43  ;;  %vm424_vm13 = vweird.f32 %v615_v57  ;;  %v430_v11 = vor.u32 1.1754944e-38, %v429_v41 }
  0xd8   :  { %513 = vst.msk [vmem:[%s1055_s4 + $0x18] sm:$0xff] %vm509_vm4, %v496_v53  ;;  %v617_v58 = vpop.eup %616  ;;  %vm425_vm0 = vmor %vm423_vm14, %vm424_vm13  ;;  %vm428_vm1 = vcmp.eq.f32.partialorder %v427_v1, 8.507059e+37  ;;  %vm483_vm2 = vweird.f32 %v1009_v39  ;;  %v490_v14 = vor.u32 1.1754944e-38, %v489_v10  ;;  %vm488_vm5 = vcmp.eq.f32.partialorder %v487_v8, 8.507059e+37 }
  0xd9   :  { %v362_v63 = vadd.f32 %v613_v46, %v361_v7  ;;  %v420_v59 = vsub.f32 1.0, %v419_v0  ;;  %v479_v61 = vmul.f32 %v617_v58, %v1009_v39  ;;  %vm484_vm15 = vweird.f32 %v617_v58 }
  0xda   :  { %vm485_vm3 = vmor %vm483_vm2, %vm484_vm15 }
  0xdb   :  { %v366_v55 = vsel %vm365_vm11, %v613_v46, %v362_v63  ;;  %v421_v25 = vmul.f32 %v615_v57, %v420_v59  ;;  %v480_v3 = vsub.f32 1.0, %v479_v61 }
  0xdc   :  { %v371_v62 = vsel %vm368_vm12, %v370_v40, %v366_v55 }
  0xdd   :  { %v500_v24 = vmul.f32 %v371_v62, %v933_v23  ;;  %v422_v4 = vadd.f32 %v615_v57, %v421_v25  ;;  %v481_v5 = vmul.f32 %v617_v58, %v480_v3 }
  0xdf   :  { %517 = vst.msk [vmem:[%s1055_s4 + $0x38] sm:$0xff] %vm509_vm4, %v500_v24  ;;  %v426_v12 = vsel %vm425_vm0, %v615_v57, %v422_v4  ;;  %v482_v23 = vadd.f32 %v617_v58, %v481_v5 }
  0xe0   :  { %v431_v13 = vsel %vm428_vm1, %v430_v11, %v426_v12 }
  0xe1   :  { %v504_v2 = vmul.f32 %v431_v13, %v947_v31  ;;  %v486_v15 = vsel %vm485_vm3, %v617_v58, %v482_v23 }
  0xe2   :  { %v491_v16 = vsel %vm488_vm5, %v490_v14, %v486_v15 }
  0xe3   :  { %521 = vst.msk [vmem:[%s1055_s4 + $0x58] sm:$0xff] %vm509_vm4, %v504_v2  ;;  %v508_v17 = vmul.f32 %v491_v16, %v952_v44 }
  0xe5   :  { %525 = vst.msk [vmem:[%s1055_s4 + $0x78] sm:$0xff] %vm509_vm4, %v508_v17 }

</bundles_post_ra>
